<compile_context>
chip_gen: v7x
topology: tpu7x:2x2x1
jax: 0.10.0
libtpu: 0.0.40
codegen_flags: <defaults>
</compile_context>

<pallas_src>
import jax
import jax.numpy as jnp
from jax import lax
from jax.experimental import pallas as pl
from jax.experimental.pallas import tpu as pltpu


def rnn_kernel(x_ref, wih_ref, whh_ref, b_ref, wout_ref, bout_ref,
               out_ref, hall_ref):
    S, B, I = x_ref.shape
    H = whh_ref.shape[0]
    O = wout_ref.shape[1]

    # ---- Input projection for ALL timesteps (non-recurrent, hoisted) ----
    if I == 1:
        # (S, B, 1) * (1, 1, H) -> (S, B, H): outer product on the VPU,
        # avoids a wasteful K=1 MXU matmul.
        xp = x_ref[...] * wih_ref[...].reshape(1, 1, H)
    else:
        xp = jnp.dot(x_ref[...].reshape(S * B, I), wih_ref[...],
                     preferred_element_type=jnp.float32).reshape(S, B, H)
    # Fold both RNN biases in once (single broadcast, outside the loop).
    hall_ref[...] = xp + b_ref[...].reshape(1, 1, H)

    # ---- Sequential recurrence: h_t = relu(xp_t + h_{t-1} @ W_hh^T) ----
    whh = whh_ref[...]                              # (H, H), resident in vregs
    h0 = jnp.zeros((B, H), jnp.float32)

    def step(t, h):
        pre = hall_ref[t] + jnp.dot(h, whh, preferred_element_type=jnp.float32)
        h_new = jnp.maximum(pre, 0.0)
        hall_ref[t] = h_new                         # overwrite xp_t with h_t
        return h_new

    unroll = S if S <= 64 else 8                    # full unroll for short seqs
    lax.fori_loop(0, S, step, h0, unroll=unroll)

    # ---- Output projection hoisted out of the loop: one batched matmul ----
    h_all = hall_ref[...].reshape(S * B, H)
    out = (jnp.dot(h_all, wout_ref[...], preferred_element_type=jnp.float32)
           + bout_ref[...])                         # (S*B, O)
    out_ref[...] = out.reshape(S, B, O).astype(out_ref.dtype)


def my_rnn_forward(x, w_ih, w_hh, b_ih, b_hh, w_out, b_out):
    """x: (S, B, I) f32.  Weights in PyTorch convention:
       w_ih (H, I), w_hh (H, H), b_ih (H,), b_hh (H,), w_out (O, H), b_out (O,)."""
    S, B, I = x.shape
    H = w_ih.shape[0]
    O = w_out.shape[0]

    # Glue: pre-transpose weights, fold the two RNN biases together.
    wih_t = w_ih.T                                  # (I, H)
    whh_t = w_hh.T                                  # (H, H)
    b = (b_ih + b_hh).reshape(1, H)                 # (1, H)
    wout_t = w_out.T                                # (H, O)
    bo = b_out.reshape(1, O)                        # (1, O)

    return pl.pallas_call(
        rnn_kernel,
        out_shape=jax.ShapeDtypeStruct((S, B, O), jnp.float32),
        # Single invocation, everything resident in VMEM (tiny at these shapes).
        in_specs=[pl.BlockSpec(memory_space=pltpu.MemorySpace.VMEM)] * 6,
        out_specs=pl.BlockSpec(memory_space=pltpu.MemorySpace.VMEM),
        scratch_shapes=[pltpu.VMEM((S, B, H), jnp.float32)],  # xp_t / h_t buffer
    )(x, wih_t, whh_t, b, wout_t, bo)


def my_rnn_reference(x, w_ih, w_hh, b_ih, b_hh, w_out, b_out):
    """Pure-JAX reference of the PyTorch forward (for verification)."""
    H = w_ih.shape[0]
    B = x.shape[1]

    def step(h, x_t):
        h_new = jnp.maximum(x_t @ w_ih.T + b_ih + h @ w_hh.T + b_hh, 0.0)
        return h_new, h_new

    h0 = jnp.zeros((B, H), jnp.float32)
    _, hs = lax.scan(step, h0, x)                   # (S, B, H)
    return hs @ w_out.T + b_out                     # (S, B, O)


if __name__ == "__main__":
    # Small shapes consistent with the module: input_size=1, output_size=1,
    # num_layers=1, hidden_size=32; seq=8, batch=4.
    S, B, I, H, O = 8, 4, 1, 32, 1

    key = jax.random.PRNGKey(0)
    ks = jax.random.split(key, 7)
    bound = 1.0 / jnp.sqrt(jnp.float32(H))          # PyTorch-style uniform init

    x = jax.random.normal(ks[0], (S, B, I), jnp.float32)
    w_ih = jax.random.uniform(ks[1], (H, I), jnp.float32, -bound, bound)
    w_hh = jax.random.uniform(ks[2], (H, H), jnp.float32, -bound, bound)
    b_ih = jax.random.uniform(ks[3], (H,), jnp.float32, -bound, bound)
    b_hh = jax.random.uniform(ks[4], (H,), jnp.float32, -bound, bound)
    w_out = jax.random.uniform(ks[5], (O, H), jnp.float32, -bound, bound)
    b_out = jax.random.uniform(ks[6], (O,), jnp.float32, -bound, bound)

    out = my_rnn_forward(x, w_ih, w_hh, b_ih, b_hh, w_out, b_out)
    out = jax.block_until_ready(out)

    ref = my_rnn_reference(x, w_ih, w_hh, b_ih, b_hh, w_out, b_out)
    assert out.shape == (S, B, O), out.shape
    assert jnp.allclose(out, ref, atol=1e-5, rtol=1e-5), float(jnp.max(jnp.abs(out - ref)))

    print("KERNEL_OK")
</pallas_src>

<mosaic_0001>
module attributes {stable_mosaic.version = 11 : i64} {
  func.func @rnn_kernel(%arg0: memref<8x4x1xf32, #tpu.memory_space<vmem>>, %arg1: memref<1x32xf32, #tpu.memory_space<vmem>>, %arg2: memref<32x32xf32, #tpu.memory_space<vmem>>, %arg3: memref<1x32xf32, #tpu.memory_space<vmem>>, %arg4: memref<32x1xf32, #tpu.memory_space<vmem>>, %arg5: memref<1x1xf32, #tpu.memory_space<vmem>>, %arg6: memref<8x4x1xf32, #tpu.memory_space<vmem>>, %arg7: memref<8x4x32xf32, #tpu.memory_space<vmem>>) attributes {dimension_semantics = [], scalar_prefetch = 0 : i64, scratch_operands = 1 : i64, tpu.core_type = #tpu.core_type<tc>} {
    %c0 = arith.constant 0 : index
    %c0_0 = arith.constant 0 : index
    %c0_1 = arith.constant 0 : index
    %0 = vector.load %arg0[%c0, %c0_0, %c0_1] : memref<8x4x1xf32, #tpu.memory_space<vmem>>, vector<8x4x1xf32>
    %c0_2 = arith.constant 0 : index
    %c0_3 = arith.constant 0 : index
    %1 = vector.load %arg1[%c0_2, %c0_3] : memref<1x32xf32, #tpu.memory_space<vmem>>, vector<1x32xf32>
    %2 = vector.shape_cast %1 : vector<1x32xf32> to vector<1x1x32xf32>
    %3 = vector.broadcast %0 : vector<8x4x1xf32> to vector<8x4x32xf32>
    %4 = vector.broadcast %2 : vector<1x1x32xf32> to vector<8x4x32xf32>
    %5 = arith.mulf %3, %4 : vector<8x4x32xf32>
    %c0_4 = arith.constant 0 : index
    %c0_5 = arith.constant 0 : index
    %6 = vector.load %arg3[%c0_4, %c0_5] : memref<1x32xf32, #tpu.memory_space<vmem>>, vector<1x32xf32>
    %7 = vector.shape_cast %6 : vector<1x32xf32> to vector<1x1x32xf32>
    %8 = vector.broadcast %7 : vector<1x1x32xf32> to vector<8x4x32xf32>
    %9 = arith.addf %5, %8 : vector<8x4x32xf32>
    %c0_6 = arith.constant 0 : index
    %c0_7 = arith.constant 0 : index
    %c0_8 = arith.constant 0 : index
    %10 = vector.load %arg7[%c0_6, %c0_7, %c0_8] : memref<8x4x32xf32, #tpu.memory_space<vmem>>, vector<8x4x32xf32>
    tpu.vector_store %arg7[%c0_6, %c0_7, %c0_8], %9 {strides = array<i32>} : memref<8x4x32xf32, #tpu.memory_space<vmem>>, vector<8x4x32xf32>,
    %c0_9 = arith.constant 0 : index
    %c0_10 = arith.constant 0 : index
    %11 = vector.load %arg2[%c0_9, %c0_10] : memref<32x32xf32, #tpu.memory_space<vmem>>, vector<32x32xf32>
    %cst = arith.constant 0.000000e+00 : f32
    %12 = vector.broadcast %cst : f32 to vector<4x32xf32>
    %c0_i32 = arith.constant 0 : i32
    %13 = arith.index_cast %c0_i32 : i32 to index
    %c0_11 = arith.constant 0 : index
    %c0_12 = arith.constant 0 : index
    %14 = vector.load %arg7[%13, %c0_11, %c0_12] : memref<8x4x32xf32, #tpu.memory_space<vmem>>, vector<1x4x32xf32>
    %15 = vector.shape_cast %14 : vector<1x4x32xf32> to vector<4x32xf32>
    %cst_13 = arith.constant dense<0.000000e+00> : vector<4x32xf32>
    %16 = tpu.matmul %12, %11, %cst_13 {dimension_numbers = #tpu.dot_dimension_numbers<[1], [0], [0], [1], [0, 0, 1, 1], [], []>} : vector<4x32xf32>, vector<32x32xf32>, vector<4x32xf32> -> vector<4x32xf32>
    %17 = arith.addf %15, %16 : vector<4x32xf32>
    %cst_14 = arith.constant 0.000000e+00 : f32
    %18 = vector.broadcast %cst_14 : f32 to vector<4x32xf32>
    %19 = arith.maximumf %17, %18 : vector<4x32xf32>
    %20 = arith.index_cast %c0_i32 : i32 to index
    %c0_15 = arith.constant 0 : index
    %c0_16 = arith.constant 0 : index
    %21 = vector.load %arg7[%20, %c0_15, %c0_16] : memref<8x4x32xf32, #tpu.memory_space<vmem>>, vector<1x4x32xf32>
    %22 = vector.shape_cast %21 : vector<1x4x32xf32> to vector<4x32xf32>
    %23 = vector.shape_cast %19 : vector<4x32xf32> to vector<1x4x32xf32>
    tpu.vector_store %arg7[%20, %c0_15, %c0_16], %23 {strides = array<i32>} : memref<8x4x32xf32, #tpu.memory_space<vmem>>, vector<1x4x32xf32>,
    %c1_i32 = arith.constant 1 : i32
    %24 = arith.index_cast %c1_i32 : i32 to index
    %c0_17 = arith.constant 0 : index
    %c0_18 = arith.constant 0 : index
    %25 = vector.load %arg7[%24, %c0_17, %c0_18] : memref<8x4x32xf32, #tpu.memory_space<vmem>>, vector<1x4x32xf32>
    %26 = vector.shape_cast %25 : vector<1x4x32xf32> to vector<4x32xf32>
    %cst_19 = arith.constant dense<0.000000e+00> : vector<4x32xf32>
    %27 = tpu.matmul %19, %11, %cst_19 {dimension_numbers = #tpu.dot_dimension_numbers<[1], [0], [0], [1], [0, 0, 1, 1], [], []>} : vector<4x32xf32>, vector<32x32xf32>, vector<4x32xf32> -> vector<4x32xf32>
    %28 = arith.addf %26, %27 : vector<4x32xf32>
    %cst_20 = arith.constant 0.000000e+00 : f32
    %29 = vector.broadcast %cst_20 : f32 to vector<4x32xf32>
    %30 = arith.maximumf %28, %29 : vector<4x32xf32>
    %31 = arith.index_cast %c1_i32 : i32 to index
    %c0_21 = arith.constant 0 : index
    %c0_22 = arith.constant 0 : index
    %32 = vector.load %arg7[%31, %c0_21, %c0_22] : memref<8x4x32xf32, #tpu.memory_space<vmem>>, vector<1x4x32xf32>
    %33 = vector.shape_cast %32 : vector<1x4x32xf32> to vector<4x32xf32>
    %34 = vector.shape_cast %30 : vector<4x32xf32> to vector<1x4x32xf32>
    tpu.vector_store %arg7[%31, %c0_21, %c0_22], %34 {strides = array<i32>} : memref<8x4x32xf32, #tpu.memory_space<vmem>>, vector<1x4x32xf32>,
    %c2_i32 = arith.constant 2 : i32
    %35 = arith.index_cast %c2_i32 : i32 to index
    %c0_23 = arith.constant 0 : index
    %c0_24 = arith.constant 0 : index
    %36 = vector.load %arg7[%35, %c0_23, %c0_24] : memref<8x4x32xf32, #tpu.memory_space<vmem>>, vector<1x4x32xf32>
    %37 = vector.shape_cast %36 : vector<1x4x32xf32> to vector<4x32xf32>
    %cst_25 = arith.constant dense<0.000000e+00> : vector<4x32xf32>
    %38 = tpu.matmul %30, %11, %cst_25 {dimension_numbers = #tpu.dot_dimension_numbers<[1], [0], [0], [1], [0, 0, 1, 1], [], []>} : vector<4x32xf32>, vector<32x32xf32>, vector<4x32xf32> -> vector<4x32xf32>
    %39 = arith.addf %37, %38 : vector<4x32xf32>
    %cst_26 = arith.constant 0.000000e+00 : f32
    %40 = vector.broadcast %cst_26 : f32 to vector<4x32xf32>
    %41 = arith.maximumf %39, %40 : vector<4x32xf32>
    %42 = arith.index_cast %c2_i32 : i32 to index
    %c0_27 = arith.constant 0 : index
    %c0_28 = arith.constant 0 : index
    %43 = vector.load %arg7[%42, %c0_27, %c0_28] : memref<8x4x32xf32, #tpu.memory_space<vmem>>, vector<1x4x32xf32>
    %44 = vector.shape_cast %43 : vector<1x4x32xf32> to vector<4x32xf32>
    %45 = vector.shape_cast %41 : vector<4x32xf32> to vector<1x4x32xf32>
    tpu.vector_store %arg7[%42, %c0_27, %c0_28], %45 {strides = array<i32>} : memref<8x4x32xf32, #tpu.memory_space<vmem>>, vector<1x4x32xf32>,
    %c3_i32 = arith.constant 3 : i32
    %46 = arith.index_cast %c3_i32 : i32 to index
    %c0_29 = arith.constant 0 : index
    %c0_30 = arith.constant 0 : index
    %47 = vector.load %arg7[%46, %c0_29, %c0_30] : memref<8x4x32xf32, #tpu.memory_space<vmem>>, vector<1x4x32xf32>
    %48 = vector.shape_cast %47 : vector<1x4x32xf32> to vector<4x32xf32>
    %cst_31 = arith.constant dense<0.000000e+00> : vector<4x32xf32>
    %49 = tpu.matmul %41, %11, %cst_31 {dimension_numbers = #tpu.dot_dimension_numbers<[1], [0], [0], [1], [0, 0, 1, 1], [], []>} : vector<4x32xf32>, vector<32x32xf32>, vector<4x32xf32> -> vector<4x32xf32>
    %50 = arith.addf %48, %49 : vector<4x32xf32>
    %cst_32 = arith.constant 0.000000e+00 : f32
    %51 = vector.broadcast %cst_32 : f32 to vector<4x32xf32>
    %52 = arith.maximumf %50, %51 : vector<4x32xf32>
    %53 = arith.index_cast %c3_i32 : i32 to index
    %c0_33 = arith.constant 0 : index
    %c0_34 = arith.constant 0 : index
    %54 = vector.load %arg7[%53, %c0_33, %c0_34] : memref<8x4x32xf32, #tpu.memory_space<vmem>>, vector<1x4x32xf32>
    %55 = vector.shape_cast %54 : vector<1x4x32xf32> to vector<4x32xf32>
    %56 = vector.shape_cast %52 : vector<4x32xf32> to vector<1x4x32xf32>
    tpu.vector_store %arg7[%53, %c0_33, %c0_34], %56 {strides = array<i32>} : memref<8x4x32xf32, #tpu.memory_space<vmem>>, vector<1x4x32xf32>,
    %c4_i32 = arith.constant 4 : i32
    %57 = arith.index_cast %c4_i32 : i32 to index
    %c0_35 = arith.constant 0 : index
    %c0_36 = arith.constant 0 : index
    %58 = vector.load %arg7[%57, %c0_35, %c0_36] : memref<8x4x32xf32, #tpu.memory_space<vmem>>, vector<1x4x32xf32>
    %59 = vector.shape_cast %58 : vector<1x4x32xf32> to vector<4x32xf32>
    %cst_37 = arith.constant dense<0.000000e+00> : vector<4x32xf32>
    %60 = tpu.matmul %52, %11, %cst_37 {dimension_numbers = #tpu.dot_dimension_numbers<[1], [0], [0], [1], [0, 0, 1, 1], [], []>} : vector<4x32xf32>, vector<32x32xf32>, vector<4x32xf32> -> vector<4x32xf32>
    %61 = arith.addf %59, %60 : vector<4x32xf32>
    %cst_38 = arith.constant 0.000000e+00 : f32
    %62 = vector.broadcast %cst_38 : f32 to vector<4x32xf32>
    %63 = arith.maximumf %61, %62 : vector<4x32xf32>
    %64 = arith.index_cast %c4_i32 : i32 to index
    %c0_39 = arith.constant 0 : index
    %c0_40 = arith.constant 0 : index
    %65 = vector.load %arg7[%64, %c0_39, %c0_40] : memref<8x4x32xf32, #tpu.memory_space<vmem>>, vector<1x4x32xf32>
    %66 = vector.shape_cast %65 : vector<1x4x32xf32> to vector<4x32xf32>
    %67 = vector.shape_cast %63 : vector<4x32xf32> to vector<1x4x32xf32>
    tpu.vector_store %arg7[%64, %c0_39, %c0_40], %67 {strides = array<i32>} : memref<8x4x32xf32, #tpu.memory_space<vmem>>, vector<1x4x32xf32>,
    %c5_i32 = arith.constant 5 : i32
    %68 = arith.index_cast %c5_i32 : i32 to index
    %c0_41 = arith.constant 0 : index
    %c0_42 = arith.constant 0 : index
    %69 = vector.load %arg7[%68, %c0_41, %c0_42] : memref<8x4x32xf32, #tpu.memory_space<vmem>>, vector<1x4x32xf32>
    %70 = vector.shape_cast %69 : vector<1x4x32xf32> to vector<4x32xf32>
    %cst_43 = arith.constant dense<0.000000e+00> : vector<4x32xf32>
    %71 = tpu.matmul %63, %11, %cst_43 {dimension_numbers = #tpu.dot_dimension_numbers<[1], [0], [0], [1], [0, 0, 1, 1], [], []>} : vector<4x32xf32>, vector<32x32xf32>, vector<4x32xf32> -> vector<4x32xf32>
    %72 = arith.addf %70, %71 : vector<4x32xf32>
    %cst_44 = arith.constant 0.000000e+00 : f32
    %73 = vector.broadcast %cst_44 : f32 to vector<4x32xf32>
    %74 = arith.maximumf %72, %73 : vector<4x32xf32>
    %75 = arith.index_cast %c5_i32 : i32 to index
    %c0_45 = arith.constant 0 : index
    %c0_46 = arith.constant 0 : index
    %76 = vector.load %arg7[%75, %c0_45, %c0_46] : memref<8x4x32xf32, #tpu.memory_space<vmem>>, vector<1x4x32xf32>
    %77 = vector.shape_cast %76 : vector<1x4x32xf32> to vector<4x32xf32>
    %78 = vector.shape_cast %74 : vector<4x32xf32> to vector<1x4x32xf32>
    tpu.vector_store %arg7[%75, %c0_45, %c0_46], %78 {strides = array<i32>} : memref<8x4x32xf32, #tpu.memory_space<vmem>>, vector<1x4x32xf32>,
    %c6_i32 = arith.constant 6 : i32
    %79 = arith.index_cast %c6_i32 : i32 to index
    %c0_47 = arith.constant 0 : index
    %c0_48 = arith.constant 0 : index
    %80 = vector.load %arg7[%79, %c0_47, %c0_48] : memref<8x4x32xf32, #tpu.memory_space<vmem>>, vector<1x4x32xf32>
    %81 = vector.shape_cast %80 : vector<1x4x32xf32> to vector<4x32xf32>
    %cst_49 = arith.constant dense<0.000000e+00> : vector<4x32xf32>
    %82 = tpu.matmul %74, %11, %cst_49 {dimension_numbers = #tpu.dot_dimension_numbers<[1], [0], [0], [1], [0, 0, 1, 1], [], []>} : vector<4x32xf32>, vector<32x32xf32>, vector<4x32xf32> -> vector<4x32xf32>
    %83 = arith.addf %81, %82 : vector<4x32xf32>
    %cst_50 = arith.constant 0.000000e+00 : f32
    %84 = vector.broadcast %cst_50 : f32 to vector<4x32xf32>
    %85 = arith.maximumf %83, %84 : vector<4x32xf32>
    %86 = arith.index_cast %c6_i32 : i32 to index
    %c0_51 = arith.constant 0 : index
    %c0_52 = arith.constant 0 : index
    %87 = vector.load %arg7[%86, %c0_51, %c0_52] : memref<8x4x32xf32, #tpu.memory_space<vmem>>, vector<1x4x32xf32>
    %88 = vector.shape_cast %87 : vector<1x4x32xf32> to vector<4x32xf32>
    %89 = vector.shape_cast %85 : vector<4x32xf32> to vector<1x4x32xf32>
    tpu.vector_store %arg7[%86, %c0_51, %c0_52], %89 {strides = array<i32>} : memref<8x4x32xf32, #tpu.memory_space<vmem>>, vector<1x4x32xf32>,
    %c7_i32 = arith.constant 7 : i32
    %90 = arith.index_cast %c7_i32 : i32 to index
    %c0_53 = arith.constant 0 : index
    %c0_54 = arith.constant 0 : index
    %91 = vector.load %arg7[%90, %c0_53, %c0_54] : memref<8x4x32xf32, #tpu.memory_space<vmem>>, vector<1x4x32xf32>
    %92 = vector.shape_cast %91 : vector<1x4x32xf32> to vector<4x32xf32>
    %cst_55 = arith.constant dense<0.000000e+00> : vector<4x32xf32>
    %93 = tpu.matmul %85, %11, %cst_55 {dimension_numbers = #tpu.dot_dimension_numbers<[1], [0], [0], [1], [0, 0, 1, 1], [], []>} : vector<4x32xf32>, vector<32x32xf32>, vector<4x32xf32> -> vector<4x32xf32>
    %94 = arith.addf %92, %93 : vector<4x32xf32>
    %cst_56 = arith.constant 0.000000e+00 : f32
    %95 = vector.broadcast %cst_56 : f32 to vector<4x32xf32>
    %96 = arith.maximumf %94, %95 : vector<4x32xf32>
    %97 = arith.index_cast %c7_i32 : i32 to index
    %c0_57 = arith.constant 0 : index
    %c0_58 = arith.constant 0 : index
    %98 = vector.load %arg7[%97, %c0_57, %c0_58] : memref<8x4x32xf32, #tpu.memory_space<vmem>>, vector<1x4x32xf32>
    %99 = vector.shape_cast %98 : vector<1x4x32xf32> to vector<4x32xf32>
    %100 = vector.shape_cast %96 : vector<4x32xf32> to vector<1x4x32xf32>
    tpu.vector_store %arg7[%97, %c0_57, %c0_58], %100 {strides = array<i32>} : memref<8x4x32xf32, #tpu.memory_space<vmem>>, vector<1x4x32xf32>,
    %c8_i32 = arith.constant 8 : i32
    %c0_59 = arith.constant 0 : index
    %c0_60 = arith.constant 0 : index
    %c0_61 = arith.constant 0 : index
    %101 = vector.load %arg7[%c0_59, %c0_60, %c0_61] : memref<8x4x32xf32, #tpu.memory_space<vmem>>, vector<8x4x32xf32>
    %102 = vector.shape_cast %101 : vector<8x4x32xf32> to vector<32x32xf32>
    %c0_62 = arith.constant 0 : index
    %c0_63 = arith.constant 0 : index
    %103 = vector.load %arg4[%c0_62, %c0_63] : memref<32x1xf32, #tpu.memory_space<vmem>>, vector<32x1xf32>
    %cst_64 = arith.constant dense<0.000000e+00> : vector<32x1xf32>
    %104 = tpu.matmul %102, %103, %cst_64 {dimension_numbers = #tpu.dot_dimension_numbers<[1], [0], [0], [1], [0, 0, 1, 1], [], []>} : vector<32x32xf32>, vector<32x1xf32>, vector<32x1xf32> -> vector<32x1xf32>
    %c0_65 = arith.constant 0 : index
    %c0_66 = arith.constant 0 : index
    %105 = vector.load %arg5[%c0_65, %c0_66] : memref<1x1xf32, #tpu.memory_space<vmem>>, vector<1x1xf32>
    %106 = vector.broadcast %105 : vector<1x1xf32> to vector<32x1xf32>
    %107 = arith.addf %104, %106 : vector<32x1xf32>
    %108 = vector.shape_cast %107 : vector<32x1xf32> to vector<8x4x1xf32>
    %c0_67 = arith.constant 0 : index
    %c0_68 = arith.constant 0 : index
    %c0_69 = arith.constant 0 : index
    %109 = vector.load %arg6[%c0_67, %c0_68, %c0_69] : memref<8x4x1xf32, #tpu.memory_space<vmem>>, vector<8x4x1xf32>
    tpu.vector_store %arg6[%c0_67, %c0_68, %c0_69], %108 {strides = array<i32>} : memref<8x4x1xf32, #tpu.memory_space<vmem>>, vector<8x4x1xf32>,
    return
  }
}

</mosaic_0001>

<bundles_post_ra>
// kernel: tpu_custom_call.1
= control target key start
LH: loop header
LB: loop body
LE: loop exit
PB: predicated region body
PF: predicated region fallthrough
CT: control target
= control target key end

     0   :  { %v1119_v0 = vmov 0.0|0.0   ;;  %vm1120_vm0 = vmmov 0   ;;  %v1121_v4 = vmov 0.0   ;;  %v1122_v7 = vmov 0   ;;  %s1347_s2 = inlined_call_operand.vmem [shape: f32[32,32], index: 2, kind: input, shape index: {}]   ;;  %s1348_s0 = inlined_call_operand.vmem [shape: f32[8,4,1], index: 0, kind: input, shape index: {}]   ;;  %s1349_s1 = inlined_call_operand.vmem [shape: f32[1,32], index: 1, kind: input, shape index: {}]   ;;  %s1350_s3 = inlined_call_operand.vmem [shape: f32[1,32], index: 3, kind: input, shape index: {}]   ;;  %s1351_s4 = inlined_call_operand.vmem [shape: f32[32,1], index: 4, kind: input, shape index: {}]   ;;  %s1352_s5 = inlined_call_operand.<no memory space> [shape: f32[1,1], index: 5, kind: input, shape index: {}]   ;;  %s1353_s6 = inlined_call_operand.vmem [shape: f32[8,4,1], index: 6, kind: output, shape index: {}]  }
   0x1   :  { %1053 = vmatprep.subr.bf16.mxu1 %v1119_v0  ;;  %v112_v1 = vld [vmem:[%s1347_s2] sm:$0xff]  ;;  %v113_v2 = vld [vmem:[%s1347_s2 + $0x8] sm:$0xff]  ;;  %v114_v3 = vld [vmem:[%s1347_s2 + $0x10] sm:$0xff]  ;;  %959 = vmatprep.mubr.msk.f32.mxu1 %vm1120_vm0, %v1121_v4  ;;  %vm103_vm1 = vcmask 257024   ;;  %vm117_vm2 = vcmask 261120   ;;  %vm876_vm3 = vcmask 3072  }
   0x2   :  { %v1170_v5 = vpack.c.bf16 %v113_v2, %v112_v1  ;;  %v115_v6 = vld [vmem:[%s1347_s2 + $0x18] sm:$0xff]  ;;  %1113 = vset.pattern.permute.xlu0 %v1122_v7  ;;  %v25_v8 = vld [vmem:[%s1348_s0] sm:$0xf]  ;;  %1065 = vmatprep.subr.bf16.mxu0 %v1119_v0  ;;  %v26_v10 = vld [vmem:[%s1348_s0 + $0x4] sm:$0xf] }
   0x3   :  { %36 = vperm.xlu0 %1113, %v25_v8   ;;  %981 = vmatprep.mubr.msk.f32.mxu0 %vm1120_vm0, %v1121_v4  ;;  %v1182_v9 = vpack.c.bf16 %v115_v6, %v114_v3  ;;  %v29_v11 = vld [vmem:[%s1348_s0 + $0x10] sm:$0xf]  ;;  %v31_v12 = vld [vmem:[%s1348_s0 + $0x18] sm:$0xf]  ;;  %v1210_v13 = vld [vmem:[%s1349_s1] ss:$0 sm:$0xff] }
   0x4   :  { %1055 = vmatpush3.bf16.msra.mxu1 %v1170_v5  ;;  %1067 = vmatpush3.bf16.msra.mxu0 %v1170_v5  ;;  %v1215_v14 = vld [vmem:[%s1350_s3] ss:$0 sm:$0xff]  ;;  %v27_v32 = vld [vmem:[%s1348_s0 + $0x8] sm:$0xf]  ;;  %v28_v33 = vld [vmem:[%s1348_s0 + $0xc] sm:$0xf] }
   0x5   :  { %1056 = vmatprep.subr.bf16.mxu1 %v1119_v0  ;;  %1068 = vmatprep.subr.bf16.mxu0 %v1119_v0  ;;  %v30_v34 = vld [vmem:[%s1348_s0 + $0x14] sm:$0xf]  ;;  %v32_v35 = vld [vmem:[%s1348_s0 + $0x1c] sm:$0xf]  ;;  %v749_v8 = vld [vmem:[%s1351_s4 + $0x8] sm:$0xff] }
   0x6   :  { %1114 = vset.pattern.permute.xlu1 %v1122_v7  ;;  %v748_v7 = vld [vmem:[%s1351_s4] sm:$0xff] }
   0x7   :  { %41 = vperm.xlu0 %1113, %v26_v10   ;;  %46 = vperm.xlu1 %1114, %v27_v32   ;;  %v1101_v10 = vpack.c.bf16 %v749_v8, %v748_v7 }
   0x8   :  { %1058 = vmatpush3.bf16.msra.mxu1 %v1182_v9  ;;  %1070 = vmatpush3.bf16.msra.mxu0 %v1182_v9 }
   0x9   :  { %1059 = vmatprep.subr.bf16.mxu1 %v1119_v0  ;;  %1077 = vmatprep.subr.bf16.mxu0 %v1119_v0 }
   0xb   :  { %960 = vmatmul.mubr.f32.vlgmr.msra.gmra.mrb[0].mxu1 %v1121_v4  ;;  %56 = vperm.xlu0 %1113, %v29_v11  }
   0xc   :  { %1061 = vmatpush3.bf16.msra.mxu1 %v1170_v5  ;;  %970 = vmatprep.mubr.msk.f32.mxu1 %vm1120_vm0, %v1121_v4 }
   0xd   :  { %1062 = vmatprep.subr.bf16.mxu1 %v1119_v0  ;;  %51 = vperm.xlu1 %1114, %v28_v33  }
   0xf   :  { %66 = vperm.xlu0 %1113, %v31_v12  }
  0x10   :  { %1064 = vmatpush3.bf16.msra.mxu1 %v1182_v9 }
  0x11   :  { %1071 = vmatprep.subr.bf16.mxu1 %v1119_v0  ;;  %61 = vperm.xlu1 %1114, %v30_v34  }
  0x15   :  { %71 = vperm.xlu1 %1114, %v32_v35  }
  0x82   :  { %v37_v15 = vpop.permute.xlu0 %36 }
  0x83   :  { %v80_v16 = vmul.f32 %v1210_v13, %v37_v15 }
  0x85   :  { %v95_v17 = vadd.f32 %v1215_v14, %v80_v16 }
  0x86   :  { %v42_v18 = vpop.permute.xlu0 %41  ;;  %v47_v41 = vpop.permute.xlu1 %46 }
  0x87   :  { %104 = vst.msk [vmem:[#allocation2] sm:$0xf] %vm103_vm1, %v95_v17  ;;  %v81_v19 = vmul.f32 %v1210_v13, %v42_v18  ;;  %v82_v42 = vmul.f32 %v1210_v13, %v47_v41  ;;  %v11_v18 = vstv %s1352_s5 }
  0x88   :  { %12 = vst [vmem:[#allocation3] sm:$0x1] %v11_v18 }
  0x89   :  { %v96_v20 = vadd.f32 %v1215_v14, %v81_v19  ;;  %v97_v43 = vadd.f32 %v1215_v14, %v82_v42 }
  0x8a   :  { %v57_v21 = vpop.permute.xlu0 %56 }
  0x8b   :  { %105 = vst.msk [vmem:[#allocation2 + $0x4] sm:$0xf] %vm103_vm1, %v96_v20  ;;  %v84_v22 = vmul.f32 %v1210_v13, %v57_v21  ;;  %106 = vst.msk [vmem:[#allocation2 + $0x8] sm:$0xf] %vm103_vm1, %v97_v43 }
  0x8c   :  { %v52_v44 = vpop.permute.xlu1 %51 }
  0x8d   :  { %v99_v23 = vadd.f32 %v1215_v14, %v84_v22  ;;  %v83_v45 = vmul.f32 %v1210_v13, %v52_v44 }
  0x8e   :  { %v67_v24 = vpop.permute.xlu0 %66  ;;  %v116_v27 = vld [vmem:[#allocation2] sm:$0xf] }
  0x8f   :  { %108 = vst.msk [vmem:[#allocation2 + $0x10] sm:$0xf] %vm103_vm1, %v99_v23  ;;  %v86_v25 = vmul.f32 %v1210_v13, %v67_v24  ;;  %v98_v46 = vadd.f32 %v1215_v14, %v83_v45  ;;  %v898_v24 = vld [vmem:[#allocation3] ss:$0 sm:$0xff] }
  0x90   :  { %v62_v47 = vpop.permute.xlu1 %61 }
  0x91   :  { %v101_v26 = vadd.f32 %v1215_v14, %v86_v25  ;;  %107 = vst.msk [vmem:[#allocation2 + $0xc] sm:$0xf] %vm103_vm1, %v98_v46  ;;  %v85_v48 = vmul.f32 %v1210_v13, %v62_v47 }
  0x92   :  { %v195_v36 = vld [vmem:[#allocation2 + $0x4] sm:$0xf]  ;;  %v273_v53 = vld [vmem:[#allocation2 + $0x8] sm:$0xf] }
  0x93   :  { %110 = vst.msk [vmem:[#allocation2 + $0x18] sm:$0xf] %vm103_vm1, %v101_v26  ;;  %v100_v49 = vadd.f32 %v1215_v14, %v85_v48 }
  0x94   :  { %v72_v50 = vpop.permute.xlu1 %71 }
  0x95   :  { %109 = vst.msk [vmem:[#allocation2 + $0x14] sm:$0xf] %vm103_vm1, %v100_v49  ;;  %v87_v51 = vmul.f32 %v1210_v13, %v72_v50 }
  0x96   :  { %v429_v63 = vld [vmem:[#allocation2 + $0x10] sm:$0xf] }
  0x97   :  { %v102_v52 = vadd.f32 %v1215_v14, %v87_v51 }
  0x98   :  { %v351_v58 = vld [vmem:[#allocation2 + $0xc] sm:$0xf] }
  0x99   :  { %111 = vst.msk [vmem:[#allocation2 + $0x1c] sm:$0xf] %vm103_vm1, %v102_v52 }
  0x9a   :  { %v585_v19 = vld [vmem:[#allocation2 + $0x18] sm:$0xf] }
  0x9c   :  { %v507_v11 = vld [vmem:[#allocation2 + $0x14] sm:$0xf] }
  0xde   :  { %v187_v28 = vpop.f32.mrb[0].mxu1 }
  0xdf   :  { %v191_v29 = vadd.f32 %v187_v28, %v116_v27  ;;  %v961_v30 = vpop.f32.mrb[1].mxu1 }
  0xe1   :  { %v192_v31 = vmax.f32 %v191_v29, 0.0 }
  0xe3   :  { %193 = vst.msk [vmem:[#allocation2] sm:$0xf] %vm103_vm1, %v192_v31  ;;  %971 = vmatmul.mubr.msk.f32.vlgmr.msra.gmra.mrb[2].mxu1 %vm117_vm2, %v192_v31  ;;  %v663_v31 = vld [vmem:[#allocation2 + $0x1c] sm:$0xf] }
  0xe4   :  { %1073 = vmatpush3.bf16.msra.mxu1 %v1170_v5  ;;  %992 = vmatprep.mubr.msk.f32.mxu1 %vm1120_vm0, %v1121_v4 }
  0xe5   :  { %1074 = vmatprep.subr.bf16.mxu1 %v1119_v0 }
  0xe8   :  { %1076 = vmatpush3.bf16.msra.mxu1 %v1182_v9 }
  0xe9   :  { %1083 = vmatprep.subr.bf16.mxu1 %v1119_v0 }
 0x1b6   :  { %v265_v37 = vpop.f32.mrb[2].mxu1 }
 0x1b7   :  { %v269_v38 = vadd.f32 %v265_v37, %v195_v36  ;;  %v972_v39 = vpop.f32.mrb[3].mxu1 }
 0x1b9   :  { %v270_v40 = vmax.f32 %v269_v38, 0.0 }
 0x1bb   :  { %271 = vst.msk [vmem:[#allocation2 + $0x4] sm:$0xf] %vm103_vm1, %v270_v40  ;;  %982 = vmatmul.mubr.msk.f32.vlgmr.msra.gmra.mrb[0].mxu0 %vm117_vm2, %v270_v40 }
 0x1bc   :  { %1079 = vmatpush3.bf16.msra.mxu0 %v1170_v5  ;;  %1003 = vmatprep.mubr.msk.f32.mxu0 %vm1120_vm0, %v1121_v4 }
 0x1bd   :  { %1080 = vmatprep.subr.bf16.mxu0 %v1119_v0 }
 0x1c0   :  { %1082 = vmatpush3.bf16.msra.mxu0 %v1182_v9 }
 0x1c1   :  { %1089 = vmatprep.subr.bf16.mxu0 %v1119_v0 }
 0x1c2   :  { %v1115_v15 = vld [vmem:[#allocation2] sm:$0xff]  }
 0x28e   :  { %v343_v54 = vpop.f32.mrb[0].mxu0 }
 0x28f   :  { %v347_v55 = vadd.f32 %v343_v54, %v273_v53  ;;  %v983_v56 = vpop.f32.mrb[1].mxu0 }
 0x291   :  { %v348_v57 = vmax.f32 %v347_v55, 0.0 }
 0x293   :  { %349 = vst.msk [vmem:[#allocation2 + $0x8] sm:$0xf] %vm103_vm1, %v348_v57  ;;  %993 = vmatmul.mubr.msk.f32.vlgmr.msra.gmra.mrb[4].mxu1 %vm117_vm2, %v348_v57 }
 0x294   :  { %1085 = vmatpush3.bf16.msra.mxu1 %v1170_v5  ;;  %1014 = vmatprep.mubr.msk.f32.mxu1 %vm1120_vm0, %v1121_v4 }
 0x295   :  { %1086 = vmatprep.subr.bf16.mxu1 %v1119_v0 }
 0x298   :  { %1088 = vmatpush3.bf16.msra.mxu1 %v1182_v9 }
 0x299   :  { %1095 = vmatprep.subr.bf16.mxu1 %v1119_v0 }
 0x366   :  { %v421_v59 = vpop.f32.mrb[4].mxu1 }
 0x367   :  { %v425_v60 = vadd.f32 %v421_v59, %v351_v58  ;;  %v994_v61 = vpop.f32.mrb[5].mxu1 }
 0x369   :  { %v426_v62 = vmax.f32 %v425_v60, 0.0 }
 0x36b   :  { %427 = vst.msk [vmem:[#allocation2 + $0xc] sm:$0xf] %vm103_vm1, %v426_v62  ;;  %1004 = vmatmul.mubr.msk.f32.vlgmr.msra.gmra.mrb[2].mxu0 %vm117_vm2, %v426_v62 }
 0x36c   :  { %1091 = vmatpush3.bf16.msra.mxu0 %v1170_v5  ;;  %1025 = vmatprep.mubr.msk.f32.mxu0 %vm1120_vm0, %v1121_v4 }
 0x36d   :  { %1092 = vmatprep.subr.bf16.mxu0 %v1119_v0 }
 0x370   :  { %1094 = vmatpush3.bf16.msra.mxu0 %v1182_v9 }
 0x371   :  { %1102 = vmatprep.subr.bf16.mxu0 %v1101_v10 }
 0x372   :  { %v1116_v16 = vld [vmem:[#allocation2 + $0x8] sm:$0xff]  }
 0x43e   :  { %v499_v1 = vpop.f32.mrb[2].mxu0 }
 0x43f   :  { %v503_v2 = vadd.f32 %v499_v1, %v429_v63  ;;  %v1005_v3 = vpop.f32.mrb[3].mxu0 }
 0x441   :  { %v504_v6 = vmax.f32 %v503_v2, 0.0 }
 0x443   :  { %505 = vst.msk [vmem:[#allocation2 + $0x10] sm:$0xf] %vm103_vm1, %v504_v6  ;;  %1015 = vmatmul.mubr.msk.f32.vlgmr.msra.gmra.mrb[6].mxu1 %vm117_vm2, %v504_v6 }
 0x444   :  { %1097 = vmatpush3.bf16.msra.mxu1 %v1170_v5  ;;  %1036 = vmatprep.mubr.msk.f32.mxu1 %vm1120_vm0, %v1121_v4  ;;  %v750_v4 = vld [vmem:[%s1351_s4 + $0x10] sm:$0xff] }
 0x445   :  { %1098 = vmatprep.subr.bf16.mxu1 %v1119_v0  ;;  %v751_v0 = vld [vmem:[%s1351_s4 + $0x18] sm:$0xff] }
 0x446   :  { %v1105_v14 = vpack.c.bf16 %v751_v0, %v750_v4 }
 0x448   :  { %1100 = vmatpush3.bf16.msra.mxu1 %v1182_v9 }
 0x516   :  { %v577_v12 = vpop.f32.mrb[6].mxu1 }
 0x517   :  { %v581_v5 = vadd.f32 %v577_v12, %v507_v11  ;;  %v1016_v9 = vpop.f32.mrb[7].mxu1 }
 0x519   :  { %v582_v13 = vmax.f32 %v581_v5, 0.0 }
 0x51b   :  { %583 = vst.msk [vmem:[#allocation2 + $0x14] sm:$0xf] %vm103_vm1, %v582_v13  ;;  %1026 = vmatmul.mubr.msk.f32.vlgmr.msra.gmra.mrb[4].mxu0 %vm117_vm2, %v582_v13 }
 0x51c   :  { %1104 = vmatpush3.bf16.msra.mxu0 %v1101_v10  ;;  %1047 = vmatprep.mubr.msk.f32.mxu0 %vm117_vm2, %v1115_v15 }
 0x51d   :  { %1106 = vmatprep.subr.bf16.mxu0 %v1105_v14 }
 0x520   :  { %1108 = vmatpush3.bf16.msra.mxu0 %v1105_v14 }
 0x522   :  { %v1117_v17 = vld [vmem:[#allocation2 + $0x10] sm:$0xff]  }
 0x523   :  { %1048 = vmatmul.mubr.msk.f32.vlgmr.msra.gmra.mrb[6].mxu0 %vm117_vm2, %v1116_v16 }
 0x524   :  { %1050 = vmatprep.mubr.msk.f32.mxu0 %vm117_vm2, %v1117_v17 }
 0x5ee   :  { %v655_v20 = vpop.f32.mrb[4].mxu0 }
 0x5ef   :  { %v659_v21 = vadd.f32 %v655_v20, %v585_v19  ;;  %v1027_v22 = vpop.f32.mrb[5].mxu0 }
 0x5f1   :  { %v660_v23 = vmax.f32 %v659_v21, 0.0 }
 0x5f3   :  { %661 = vst.msk [vmem:[#allocation2 + $0x18] sm:$0xf] %vm103_vm1, %v660_v23  ;;  %1037 = vmatmul.mubr.msk.f32.vlgmr.msra.gmra.mrb[8].mxu1 %vm117_vm2, %v660_v23 }
 0x5f6   :  { %v1049_v25 = vpop.f32.mrb[6].mxu0 }
 0x5f7   :  { %v851_v26 = vadd.f32 %v1049_v25, %v898_v24  ;;  %v845_v27 = vpop.f32.mrb[7].mxu0 }
 0x5f8   :  { %v846_v28 = vadd.f32 %v898_v24, %v845_v27 }
 0x5f9   :  { %v869_v29 = vcombine.high %v851_v26, %v851_v26  ;;  %879 = vst.msk [vmem:[%s1353_s6 + $0x8] sm:$0xf] %vm876_vm3, %v851_v26 }
 0x5fa   :  { %v868_v30 = vcombine.high %v846_v28, %v846_v28  ;;  %877 = vst.msk [vmem:[%s1353_s6] sm:$0xf] %vm876_vm3, %v846_v28 }
 0x5fb   :  { %880 = vst.msk [vmem:[%s1353_s6 + $0xc] sm:$0xf] %vm876_vm3, %v869_v29 }
 0x5fc   :  { %878 = vst.msk [vmem:[%s1353_s6 + $0x4] sm:$0xf] %vm876_vm3, %v868_v30 }
 0x6c6   :  { %v733_v32 = vpop.f32.mrb[8].mxu1 }
 0x6c7   :  { %v737_v33 = vadd.f32 %v733_v32, %v663_v31  ;;  %v1038_v34 = vpop.f32.mrb[9].mxu1 }
 0x6c9   :  { %v738_v35 = vmax.f32 %v737_v33, 0.0 }
 0x6cb   :  { %739 = vst.msk [vmem:[#allocation2 + $0x1c] sm:$0xf] %vm103_vm1, %v738_v35 }
 0x6d2   :  { %v1118_v36 = vld [vmem:[#allocation2 + $0x18] sm:$0xff]  }
 0x6d3   :  { %1051 = vmatmul.mubr.msk.f32.gmra.mrb[8].mxu0 %vm117_vm2, %v1118_v36 }
 0x7a6   :  { %v1052_v37 = vpop.f32.mrb[8].mxu0 }
 0x7a7   :  { %v861_v38 = vadd.f32 %v1052_v37, %v898_v24  ;;  %v855_v39 = vpop.f32.mrb[9].mxu0 }
 0x7a8   :  { %v856_v40 = vadd.f32 %v898_v24, %v855_v39 }
 0x7a9   :  { %v871_v41 = vcombine.high %v861_v38, %v861_v38  ;;  %883 = vst.msk [vmem:[%s1353_s6 + $0x18] sm:$0xf] %vm876_vm3, %v861_v38 }
 0x7aa   :  { %v870_v42 = vcombine.high %v856_v40, %v856_v40  ;;  %881 = vst.msk [vmem:[%s1353_s6 + $0x10] sm:$0xf] %vm876_vm3, %v856_v40 }
 0x7ab   :  { %884 = vst.msk [vmem:[%s1353_s6 + $0x1c] sm:$0xf] %vm876_vm3, %v871_v41 }
 0x7ac   :  { %882 = vst.msk [vmem:[%s1353_s6 + $0x14] sm:$0xf] %vm876_vm3, %v870_v42 }

</bundles_post_ra>
